<compile_context>
chip_gen: v5e
topology: v5e:2x2
jax: 0.10.0
libtpu: 0.0.40
codegen_flags: <defaults>
</compile_context>

<pallas_src>
import functools

import jax
import jax.numpy as jnp
from jax.experimental import pallas as pl
from jax.experimental.pallas import tpu as pltpu

_LANE = 128      # vreg lane width
_SUBLANE = 8     # f32 sublane count
_BETA = 7.5


def _round_up(x, m):
    return ((x + m - 1) // m) * m


def _fused_mlp_kernel(x_ref, *refs, out_widths, beta):
    """Fused MLP on one batch tile.

    refs = (w0, w1, ..., w_{L-1}, bias_slab, o_ref).
    All intermediates stay in VMEM/vregs; only the final layer is stored.
    """
    o_ref = refs[-1]
    b_ref = refs[-2]
    w_refs = refs[:-2]
    n_layers = len(w_refs)
    inv_beta = 1.0 / beta

    h = x_ref[...]                       # (tm, K) f32
    b_all = b_ref[...]                   # (L, N_max) f32
    for i, w_ref in enumerate(w_refs):
        w = w_ref[...]
        n_i = out_widths[i]
        b = b_all[i, :n_i]               # static slice -> (n_i,), broadcasts over rows
        # bf16/f32 operands, f32 accumulation on the MXU.
        y = jnp.dot(h.astype(w.dtype), w, preferred_element_type=jnp.float32) + b
        if i < n_layers - 1:
            # Branch-free numerically-stable Softplus(beta); equals
            # torch.nn.Softplus(beta=7.5, threshold=20) to f32 ulp
            # (log1p(exp(-20)) underflows the mantissa).  exp/log1p -> EUP slot.
            y = jnp.maximum(y, 0.0) + jnp.log1p(jnp.exp(-jnp.abs(beta * y))) * inv_beta
        h = y
    o_ref[...] = h.astype(o_ref.dtype)


def init_decoder_params(key, input_dim, hidden_dim, output_dim, n_layer):
    """Deterministic params matching the PyTorch module's layer shapes.

    Returns list of (W_T, b) with W_T shape (in, out) and b shape (1, out).
    """
    dims = []
    in_d = input_dim
    for _ in range(n_layer):
        dims.append((in_d, hidden_dim))
        in_d = hidden_dim
    dims.append((in_d, output_dim))

    params = []
    for (fan_in, fan_out) in dims:
        key, kw, kb = jax.random.split(key, 3)
        bound = 1.0 / jnp.sqrt(fan_in)
        w_t = jax.random.uniform(kw, (fan_in, fan_out), jnp.float32, -bound, bound)
        b = jax.random.uniform(kb, (1, fan_out), jnp.float32, -bound, bound)
        params.append((w_t, b))
    return params


def prepare_decoder_params(params, dot_dtype=jnp.float32):
    """Lane-pad weights and pack biases for the fused kernel.

    Returns (weights, bias_slab, out_widths):
      * weights[i]: (K_i, N_i) with N_i padded to 128 lanes; K_i padded to 128
        for every layer except the first (its K stays = input_dim so `x` never
        needs feature padding).  Padded rows/cols are exactly zero.
      * bias_slab: (L, N_max) f32 slab, row i = layer i's bias (zero-padded).
      * out_widths: static tuple of padded output widths per layer.
    """
    weights = []
    out_widths = []
    for i, (w, _) in enumerate(params):
        k, n = w.shape
        kp = k if i == 0 else _round_up(k, _LANE)
        np_ = _round_up(n, _LANE)
        w_pad = jnp.zeros((kp, np_), jnp.float32).at[:k, :n].set(w)
        weights.append(w_pad.astype(dot_dtype))
        out_widths.append(np_)
    n_max = max(out_widths)
    bias_slab = jnp.zeros((len(params), n_max), jnp.float32)
    for i, (_, b) in enumerate(params):
        bias_slab = bias_slab.at[i, : b.shape[-1]].set(b.reshape(-1))
    return weights, bias_slab, tuple(out_widths)


def decoder_forward(x, weights, bias_slab, out_widths, *, output_dim):
    """Fused forward pass of Decoder using a single pallas_call."""
    M, K = x.shape
    assert weights[0].shape[0] == K, "first-layer W must keep unpadded input_dim rows"
    # Guard the zero-padding annihilation argument: feature dims must be
    # lane-padded exactly as produced by prepare_decoder_params.
    assert all(w.shape[1] % _LANE == 0 for w in weights)
    assert all(w.shape[0] % _LANE == 0 for w in weights[1:])
    O_pad = out_widths[-1]

    # Batch tiling: small batches run as one full block (only pad to a sublane
    # multiple); large batches stream 256-row tiles (>=2 grid steps, amortized
    # per-step overhead, both v7x TensorCores busy via "parallel").
    if M <= 512:
        tm = _round_up(max(M, _SUBLANE), _SUBLANE)
        m_pad = tm
    else:
        tm = 256
        m_pad = _round_up(M, tm)
    x_in = x if m_pad == M else jnp.zeros((m_pad, K), x.dtype).at[:M].set(x)
    grid = (m_pad // tm,)

    # VMEM budget: single-buffered weights + bias slab + double-buffered x/out
    # tiles + live hidden temporaries, with headroom; clamp to the local chip.
    weight_bytes = sum(int(w.size) * w.dtype.itemsize for w in weights)
    io_bytes = 2 * (tm * K + tm * O_pad) * 4 + int(bias_slab.size) * 4
    hidden_bytes = 2 * tm * max(out_widths) * 4
    needed = weight_bytes + io_bytes + hidden_bytes
    try:
        vmem_cap = int(pltpu.get_tpu_info().vmem_capacity_bytes)
    except Exception:
        vmem_cap = 64 * 1024 * 1024
    vmem_limit = min(max(32 * 1024 * 1024, int(needed * 1.5)), int(vmem_cap * 0.75))
    # TODO(synk): if `needed` exceeds ~0.75*VMEM (deep/wide nets, esp. v7x's
    # 64 MiB), stream stacked hidden-layer weights over a second "arbitrary"
    # grid axis with h held in a VMEM scratch instead of keeping all resident.

    kernel = functools.partial(_fused_mlp_kernel, out_widths=out_widths, beta=_BETA)

    def build(single_buffer_weights):
        resident_kwargs = (
            dict(pipeline_mode=pl.Buffered(buffer_count=1))
            if single_buffer_weights else {}
        )
        in_specs = [pl.BlockSpec((tm, K), lambda i: (i, 0))]
        for w in weights:
            kp, np_ = w.shape
            # Same block every grid step -> resident in VMEM, no re-DMA.
            in_specs.append(pl.BlockSpec((kp, np_), lambda i: (0, 0), **resident_kwargs))
        in_specs.append(pl.BlockSpec(bias_slab.shape, lambda i: (0, 0), **resident_kwargs))
        return pl.pallas_call(
            kernel,
            out_shape=jax.ShapeDtypeStruct((m_pad, O_pad), jnp.float32),
            grid=grid,
            in_specs=in_specs,
            out_specs=pl.BlockSpec((tm, O_pad), lambda i: (i, 0)),
            compiler_params=pltpu.CompilerParams(
                dimension_semantics=("parallel",),   # batch tiles split across TCs
                vmem_limit_bytes=vmem_limit,
            ),
        )

    try:
        out_pad = build(single_buffer_weights=True)(x_in, *weights, bias_slab)
        out_pad = jax.block_until_ready(out_pad)
    except Exception:
        # pl.Buffered(1) unsupported on this jax build -> default double-buffering.
        out_pad = build(single_buffer_weights=False)(x_in, *weights, bias_slab)

    return out_pad[:M, :output_dim]


def _reference_forward(x, params, beta=_BETA, threshold=20.0):
    h = x
    n = len(params)
    for i, (w, b) in enumerate(params):
        h = h @ w + b
        if i < n - 1:
            bx = beta * h
            sp = jnp.log1p(jnp.exp(jnp.minimum(bx, threshold))) / beta
            h = jnp.where(bx > threshold, h, sp)
    return h


if __name__ == "__main__":
    input_dim, hidden_dim, output_dim, n_layer = 16, 32, 8, 2
    batch = 4

    key = jax.random.PRNGKey(0)
    key, kx = jax.random.split(key)
    x = jax.random.normal(kx, (batch, input_dim), jnp.float32)

    params = init_decoder_params(key, input_dim, hidden_dim, output_dim, n_layer)
    ref = _reference_forward(x, params)

    # f32-operand path: matches the PyTorch module to 1e-5.
    w_f32, b_slab, widths = prepare_decoder_params(params, dot_dtype=jnp.float32)
    out = decoder_forward(x, w_f32, b_slab, widths, output_dim=output_dim)
    out = jax.block_until_ready(out)
    assert out.shape == (batch, output_dim)
    assert jnp.allclose(out, ref, atol=1e-5, rtol=1e-5)

    # bf16-operand / f32-accumulate path (native MXU rate on v6e/v7x, halves
    # resident weight bytes); compared against the f32 reference with a
    # tolerance appropriate for bf16 operands.
    w_bf16, b_slab2, widths2 = prepare_decoder_params(params, dot_dtype=jnp.bfloat16)
    out_bf16 = decoder_forward(x, w_bf16, b_slab2, widths2, output_dim=output_dim)
    out_bf16 = jax.block_until_ready(out_bf16)
    assert out_bf16.shape == (batch, output_dim)
    assert jnp.allclose(out_bf16, ref, atol=5e-2, rtol=5e-2)

    print("KERNEL_OK")
</pallas_src>

<mosaic_0001>
module attributes {stable_mosaic.version = 11 : i64} {
  func.func @_fused_mlp_kernel(%arg0: i32, %arg1: memref<8x16xf32, #tpu.memory_space<vmem>>, %arg2: memref<16x128xf32, #tpu.memory_space<vmem>>, %arg3: memref<128x128xf32, #tpu.memory_space<vmem>>, %arg4: memref<128x128xf32, #tpu.memory_space<vmem>>, %arg5: memref<3x128xf32, #tpu.memory_space<vmem>>, %arg6: memref<8x128xf32, #tpu.memory_space<vmem>>) attributes {dimension_semantics = [#tpu.dimension_semantics<parallel>], iteration_bounds = array<i64: 1>, scalar_prefetch = 0 : i64, scratch_operands = 0 : i64, tpu.core_type = #tpu.core_type<tc>, window_params = [{transform_indices = @transform_0, window_bounds = array<i64: 8, 16>}, {pipeline_mode = #tpu.pipeline_mode<synchronous>, transform_indices = @transform_1, window_bounds = array<i64: 16, 128>}, {pipeline_mode = #tpu.pipeline_mode<synchronous>, transform_indices = @transform_2, window_bounds = array<i64: 128, 128>}, {pipeline_mode = #tpu.pipeline_mode<synchronous>, transform_indices = @transform_3, window_bounds = array<i64: 128, 128>}, {pipeline_mode = #tpu.pipeline_mode<synchronous>, transform_indices = @transform_4, window_bounds = array<i64: 3, 128>}, {transform_indices = @transform_5, window_bounds = array<i64: 8, 128>}]} {
    %c0 = arith.constant 0 : index
    %c0_0 = arith.constant 0 : index
    %0 = vector.load %arg1[%c0, %c0_0] : memref<8x16xf32, #tpu.memory_space<vmem>>, vector<8x16xf32>
    %c0_1 = arith.constant 0 : index
    %c0_2 = arith.constant 0 : index
    %1 = vector.load %arg5[%c0_1, %c0_2] : memref<3x128xf32, #tpu.memory_space<vmem>>, vector<3x128xf32>
    %c0_3 = arith.constant 0 : index
    %c0_4 = arith.constant 0 : index
    %2 = vector.load %arg2[%c0_3, %c0_4] : memref<16x128xf32, #tpu.memory_space<vmem>>, vector<16x128xf32>
    %3 = vector.extract_strided_slice %1 {offsets = [0, 0], sizes = [1, 128], strides = [1, 1]} : vector<3x128xf32> to vector<1x128xf32>
    %4 = vector.shape_cast %3 : vector<1x128xf32> to vector<128xf32>
    %cst = arith.constant dense<0.000000e+00> : vector<8x128xf32>
    %5 = tpu.matmul %0, %2, %cst {dimension_numbers = #tpu.dot_dimension_numbers<[1], [0], [0], [1], [0, 0, 1, 1], [], []>} : vector<8x16xf32>, vector<16x128xf32>, vector<8x128xf32> -> vector<8x128xf32>
    %6 = vector.shape_cast %4 : vector<128xf32> to vector<1x128xf32>
    %7 = vector.broadcast %6 : vector<1x128xf32> to vector<8x128xf32>
    %8 = arith.addf %5, %7 : vector<8x128xf32>
    %cst_5 = arith.constant 0.000000e+00 : f32
    %9 = vector.broadcast %cst_5 : f32 to vector<8x128xf32>
    %10 = arith.maximumf %8, %9 : vector<8x128xf32>
    %cst_6 = arith.constant 7.500000e+00 : f32
    %11 = vector.broadcast %cst_6 : f32 to vector<8x128xf32>
    %12 = arith.mulf %11, %8 : vector<8x128xf32>
    %13 = math.absf %12 : vector<8x128xf32>
    %cst_7 = arith.constant 0.000000e+00 : f32
    %14 = vector.broadcast %cst_7 : f32 to vector<8x128xf32>
    %15 = arith.subf %14, %13 : vector<8x128xf32>
    %16 = math.exp %15 : vector<8x128xf32>
    %17 = math.log1p %16 : vector<8x128xf32>
    %cst_8 = arith.constant 0.13333334 : f32
    %18 = vector.broadcast %cst_8 : f32 to vector<8x128xf32>
    %19 = arith.mulf %17, %18 : vector<8x128xf32>
    %20 = arith.addf %10, %19 : vector<8x128xf32>
    %c0_9 = arith.constant 0 : index
    %c0_10 = arith.constant 0 : index
    %21 = vector.load %arg3[%c0_9, %c0_10] : memref<128x128xf32, #tpu.memory_space<vmem>>, vector<128x128xf32>
    %22 = vector.extract_strided_slice %1 {offsets = [1, 0], sizes = [1, 128], strides = [1, 1]} : vector<3x128xf32> to vector<1x128xf32>
    %23 = vector.shape_cast %22 : vector<1x128xf32> to vector<128xf32>
    %cst_11 = arith.constant dense<0.000000e+00> : vector<8x128xf32>
    %24 = tpu.matmul %20, %21, %cst_11 {dimension_numbers = #tpu.dot_dimension_numbers<[1], [0], [0], [1], [0, 0, 1, 1], [], []>} : vector<8x128xf32>, vector<128x128xf32>, vector<8x128xf32> -> vector<8x128xf32>
    %25 = vector.shape_cast %23 : vector<128xf32> to vector<1x128xf32>
    %26 = vector.broadcast %25 : vector<1x128xf32> to vector<8x128xf32>
    %27 = arith.addf %24, %26 : vector<8x128xf32>
    %cst_12 = arith.constant 0.000000e+00 : f32
    %28 = vector.broadcast %cst_12 : f32 to vector<8x128xf32>
    %29 = arith.maximumf %27, %28 : vector<8x128xf32>
    %cst_13 = arith.constant 7.500000e+00 : f32
    %30 = vector.broadcast %cst_13 : f32 to vector<8x128xf32>
    %31 = arith.mulf %30, %27 : vector<8x128xf32>
    %32 = math.absf %31 : vector<8x128xf32>
    %cst_14 = arith.constant 0.000000e+00 : f32
    %33 = vector.broadcast %cst_14 : f32 to vector<8x128xf32>
    %34 = arith.subf %33, %32 : vector<8x128xf32>
    %35 = math.exp %34 : vector<8x128xf32>
    %36 = math.log1p %35 : vector<8x128xf32>
    %cst_15 = arith.constant 0.13333334 : f32
    %37 = vector.broadcast %cst_15 : f32 to vector<8x128xf32>
    %38 = arith.mulf %36, %37 : vector<8x128xf32>
    %39 = arith.addf %29, %38 : vector<8x128xf32>
    %c0_16 = arith.constant 0 : index
    %c0_17 = arith.constant 0 : index
    %40 = vector.load %arg4[%c0_16, %c0_17] : memref<128x128xf32, #tpu.memory_space<vmem>>, vector<128x128xf32>
    %41 = vector.extract_strided_slice %1 {offsets = [2, 0], sizes = [1, 128], strides = [1, 1]} : vector<3x128xf32> to vector<1x128xf32>
    %42 = vector.shape_cast %41 : vector<1x128xf32> to vector<128xf32>
    %cst_18 = arith.constant dense<0.000000e+00> : vector<8x128xf32>
    %43 = tpu.matmul %39, %40, %cst_18 {dimension_numbers = #tpu.dot_dimension_numbers<[1], [0], [0], [1], [0, 0, 1, 1], [], []>} : vector<8x128xf32>, vector<128x128xf32>, vector<8x128xf32> -> vector<8x128xf32>
    %44 = vector.shape_cast %42 : vector<128xf32> to vector<1x128xf32>
    %45 = vector.broadcast %44 : vector<1x128xf32> to vector<8x128xf32>
    %46 = arith.addf %43, %45 : vector<8x128xf32>
    %c0_19 = arith.constant 0 : index
    %c0_20 = arith.constant 0 : index
    %47 = vector.load %arg6[%c0_19, %c0_20] : memref<8x128xf32, #tpu.memory_space<vmem>>, vector<8x128xf32>
    tpu.vector_store %arg6[%c0_19, %c0_20], %46 {strides = array<i32>} : memref<8x128xf32, #tpu.memory_space<vmem>>, vector<8x128xf32>,
    return
  }
  func.func @transform_0(%arg0: i32) -> (i32, i32) {
    %c0_i32 = arith.constant 0 : i32
    %c0_i32_0 = arith.constant 0 : i32
    return %arg0, %c0_i32 : i32, i32
  }
  func.func @transform_1(%arg0: i32) -> (i32, i32) {
    %c0_i32 = arith.constant 0 : i32
    %c0_i32_0 = arith.constant 0 : i32
    %c0_i32_1 = arith.constant 0 : i32
    return %c0_i32, %c0_i32_0 : i32, i32
  }
  func.func @transform_2(%arg0: i32) -> (i32, i32) {
    %c0_i32 = arith.constant 0 : i32
    %c0_i32_0 = arith.constant 0 : i32
    %c0_i32_1 = arith.constant 0 : i32
    return %c0_i32, %c0_i32_0 : i32, i32
  }
  func.func @transform_3(%arg0: i32) -> (i32, i32) {
    %c0_i32 = arith.constant 0 : i32
    %c0_i32_0 = arith.constant 0 : i32
    %c0_i32_1 = arith.constant 0 : i32
    return %c0_i32, %c0_i32_0 : i32, i32
  }
  func.func @transform_4(%arg0: i32) -> (i32, i32) {
    %c0_i32 = arith.constant 0 : i32
    %c0_i32_0 = arith.constant 0 : i32
    %c0_i32_1 = arith.constant 0 : i32
    return %c0_i32, %c0_i32_0 : i32, i32
  }
  func.func @transform_5(%arg0: i32) -> (i32, i32) {
    %c0_i32 = arith.constant 0 : i32
    %c0_i32_0 = arith.constant 0 : i32
    return %arg0, %c0_i32 : i32, i32
  }
}

module attributes {stable_mosaic.version = 11 : i64} {
  func.func @_fused_mlp_kernel(%arg0: i32, %arg1: memref<8x16xf32, #tpu.memory_space<vmem>>, %arg2: memref<16x128xf32, #tpu.memory_space<vmem>>, %arg3: memref<128x128xf32, #tpu.memory_space<vmem>>, %arg4: memref<128x128xf32, #tpu.memory_space<vmem>>, %arg5: memref<3x128xf32, #tpu.memory_space<vmem>>, %arg6: memref<8x128xf32, #tpu.memory_space<vmem>>) attributes {dimension_semantics = [#tpu.dimension_semantics<parallel>], iteration_bounds = array<i64: 1>, scalar_prefetch = 0 : i64, scratch_operands = 0 : i64, tpu.core_type = #tpu.core_type<tc>, window_params = [{transform_indices = @transform_0, window_bounds = array<i64: 8, 16>}, {pipeline_mode = #tpu.pipeline_mode<synchronous>, transform_indices = @transform_1, window_bounds = array<i64: 16, 128>}, {pipeline_mode = #tpu.pipeline_mode<synchronous>, transform_indices = @transform_2, window_bounds = array<i64: 128, 128>}, {pipeline_mode = #tpu.pipeline_mode<synchronous>, transform_indices = @transform_3, window_bounds = array<i64: 128, 128>}, {pipeline_mode = #tpu.pipeline_mode<synchronous>, transform_indices = @transform_4, window_bounds = array<i64: 3, 128>}, {transform_indices = @transform_5, window_bounds = array<i64: 8, 128>}]} {
    %c0 = arith.constant 0 : index
    %c0_0 = arith.constant 0 : index
    %0 = vector.load %arg1[%c0, %c0_0] : memref<8x16xf32, #tpu.memory_space<vmem>>, vector<8x16xf32>
    %c0_1 = arith.constant 0 : index
    %c0_2 = arith.constant 0 : index
    %1 = vector.load %arg5[%c0_1, %c0_2] : memref<3x128xf32, #tpu.memory_space<vmem>>, vector<3x128xf32>
    %c0_3 = arith.constant 0 : index
    %c0_4 = arith.constant 0 : index
    %2 = vector.load %arg2[%c0_3, %c0_4] : memref<16x128xf32, #tpu.memory_space<vmem>>, vector<16x128xf32>
    %3 = vector.extract_strided_slice %1 {offsets = [0, 0], sizes = [1, 128], strides = [1, 1]} : vector<3x128xf32> to vector<1x128xf32>
    %4 = vector.shape_cast %3 : vector<1x128xf32> to vector<128xf32>
    %cst = arith.constant dense<0.000000e+00> : vector<8x128xf32>
    %5 = tpu.matmul %0, %2, %cst {dimension_numbers = #tpu.dot_dimension_numbers<[1], [0], [0], [1], [0, 0, 1, 1], [], []>} : vector<8x16xf32>, vector<16x128xf32>, vector<8x128xf32> -> vector<8x128xf32>
    %6 = vector.shape_cast %4 : vector<128xf32> to vector<1x128xf32>
    %7 = vector.broadcast %6 : vector<1x128xf32> to vector<8x128xf32>
    %8 = arith.addf %5, %7 : vector<8x128xf32>
    %cst_5 = arith.constant 0.000000e+00 : f32
    %9 = vector.broadcast %cst_5 : f32 to vector<8x128xf32>
    %10 = arith.maximumf %8, %9 : vector<8x128xf32>
    %cst_6 = arith.constant 7.500000e+00 : f32
    %11 = vector.broadcast %cst_6 : f32 to vector<8x128xf32>
    %12 = arith.mulf %11, %8 : vector<8x128xf32>
    %13 = math.absf %12 : vector<8x128xf32>
    %cst_7 = arith.constant 0.000000e+00 : f32
    %14 = vector.broadcast %cst_7 : f32 to vector<8x128xf32>
    %15 = arith.subf %14, %13 : vector<8x128xf32>
    %16 = math.exp %15 : vector<8x128xf32>
    %17 = math.log1p %16 : vector<8x128xf32>
    %cst_8 = arith.constant 0.13333334 : f32
    %18 = vector.broadcast %cst_8 : f32 to vector<8x128xf32>
    %19 = arith.mulf %17, %18 : vector<8x128xf32>
    %20 = arith.addf %10, %19 : vector<8x128xf32>
    %c0_9 = arith.constant 0 : index
    %c0_10 = arith.constant 0 : index
    %21 = vector.load %arg3[%c0_9, %c0_10] : memref<128x128xf32, #tpu.memory_space<vmem>>, vector<128x128xf32>
    %22 = vector.extract_strided_slice %1 {offsets = [1, 0], sizes = [1, 128], strides = [1, 1]} : vector<3x128xf32> to vector<1x128xf32>
    %23 = vector.shape_cast %22 : vector<1x128xf32> to vector<128xf32>
    %cst_11 = arith.constant dense<0.000000e+00> : vector<8x128xf32>
    %24 = tpu.matmul %20, %21, %cst_11 {dimension_numbers = #tpu.dot_dimension_numbers<[1], [0], [0], [1], [0, 0, 1, 1], [], []>} : vector<8x128xf32>, vector<128x128xf32>, vector<8x128xf32> -> vector<8x128xf32>
    %25 = vector.shape_cast %23 : vector<128xf32> to vector<1x128xf32>
    %26 = vector.broadcast %25 : vector<1x128xf32> to vector<8x128xf32>
    %27 = arith.addf %24, %26 : vector<8x128xf32>
    %cst_12 = arith.constant 0.000000e+00 : f32
    %28 = vector.broadcast %cst_12 : f32 to vector<8x128xf32>
    %29 = arith.maximumf %27, %28 : vector<8x128xf32>
    %cst_13 = arith.constant 7.500000e+00 : f32
    %30 = vector.broadcast %cst_13 : f32 to vector<8x128xf32>
    %31 = arith.mulf %30, %27 : vector<8x128xf32>
    %32 = math.absf %31 : vector<8x128xf32>
    %cst_14 = arith.constant 0.000000e+00 : f32
    %33 = vector.broadcast %cst_14 : f32 to vector<8x128xf32>
    %34 = arith.subf %33, %32 : vector<8x128xf32>
    %35 = math.exp %34 : vector<8x128xf32>
    %36 = math.log1p %35 : vector<8x128xf32>
    %cst_15 = arith.constant 0.13333334 : f32
    %37 = vector.broadcast %cst_15 : f32 to vector<8x128xf32>
    %38 = arith.mulf %36, %37 : vector<8x128xf32>
    %39 = arith.addf %29, %38 : vector<8x128xf32>
    %c0_16 = arith.constant 0 : index
    %c0_17 = arith.constant 0 : index
    %40 = vector.load %arg4[%c0_16, %c0_17] : memref<128x128xf32, #tpu.memory_space<vmem>>, vector<128x128xf32>
    %41 = vector.extract_strided_slice %1 {offsets = [2, 0], sizes = [1, 128], strides = [1, 1]} : vector<3x128xf32> to vector<1x128xf32>
    %42 = vector.shape_cast %41 : vector<1x128xf32> to vector<128xf32>
    %cst_18 = arith.constant dense<0.000000e+00> : vector<8x128xf32>
    %43 = tpu.matmul %39, %40, %cst_18 {dimension_numbers = #tpu.dot_dimension_numbers<[1], [0], [0], [1], [0, 0, 1, 1], [], []>} : vector<8x128xf32>, vector<128x128xf32>, vector<8x128xf32> -> vector<8x128xf32>
    %44 = vector.shape_cast %42 : vector<128xf32> to vector<1x128xf32>
    %45 = vector.broadcast %44 : vector<1x128xf32> to vector<8x128xf32>
    %46 = arith.addf %43, %45 : vector<8x128xf32>
    %c0_19 = arith.constant 0 : index
    %c0_20 = arith.constant 0 : index
    %47 = vector.load %arg6[%c0_19, %c0_20] : memref<8x128xf32, #tpu.memory_space<vmem>>, vector<8x128xf32>
    tpu.vector_store %arg6[%c0_19, %c0_20], %46 {strides = array<i32>} : memref<8x128xf32, #tpu.memory_space<vmem>>, vector<8x128xf32>,
    return
  }
  func.func @transform_0(%arg0: i32) -> (i32, i32) {
    %c0_i32 = arith.constant 0 : i32
    %c0_i32_0 = arith.constant 0 : i32
    return %arg0, %c0_i32 : i32, i32
  }
  func.func @transform_1(%arg0: i32) -> (i32, i32) {
    %c0_i32 = arith.constant 0 : i32
    %c0_i32_0 = arith.constant 0 : i32
    %c0_i32_1 = arith.constant 0 : i32
    return %c0_i32, %c0_i32_0 : i32, i32
  }
  func.func @transform_2(%arg0: i32) -> (i32, i32) {
    %c0_i32 = arith.constant 0 : i32
    %c0_i32_0 = arith.constant 0 : i32
    %c0_i32_1 = arith.constant 0 : i32
    return %c0_i32, %c0_i32_0 : i32, i32
  }
  func.func @transform_3(%arg0: i32) -> (i32, i32) {
    %c0_i32 = arith.constant 0 : i32
    %c0_i32_0 = arith.constant 0 : i32
    %c0_i32_1 = arith.constant 0 : i32
    return %c0_i32, %c0_i32_0 : i32, i32
  }
  func.func @transform_4(%arg0: i32) -> (i32, i32) {
    %c0_i32 = arith.constant 0 : i32
    %c0_i32_0 = arith.constant 0 : i32
    %c0_i32_1 = arith.constant 0 : i32
    return %c0_i32, %c0_i32_0 : i32, i32
  }
  func.func @transform_5(%arg0: i32) -> (i32, i32) {
    %c0_i32 = arith.constant 0 : i32
    %c0_i32_0 = arith.constant 0 : i32
    return %arg0, %c0_i32 : i32, i32
  }
}

</mosaic_0001>

<bundles_post_ra>
// kernel: tpu_custom_call.1
= control target key start
LH: loop header
LB: loop body
LE: loop exit
PB: predicated region body
PF: predicated region fallthrough
CT: control target
= control target key end

     0   :  { %10 = vsyncpa [#allocation3], 0  ;;  %s482_s0 = inlined_call_operand.hbm [shape: f32[8,16], index: 0, kind: input, shape index: {}]   ;;  %s483_s1 = inlined_call_operand.hbm [shape: f32[16,128], index: 1, kind: input, shape index: {}]   ;;  %s484_s2 = inlined_call_operand.hbm [shape: f32[128,128], index: 2, kind: input, shape index: {}]   ;;  %s485_s3 = inlined_call_operand.hbm [shape: f32[128,128], index: 3, kind: input, shape index: {}]   ;;  %s486_s4 = inlined_call_operand.hbm [shape: f32[3,128], index: 4, kind: input, shape index: {}]   ;;  %s487_s5 = inlined_call_operand.hbm [shape: f32[8,128], index: 5, kind: output, shape index: {}]  }
   0x1   :  { %11 = vsyncpa [#allocation6], 0 }
   0x2   :  { %12 = vsyncpa [#allocation9], 0  ;;  %s29_s20 = sshll.u32 %s483_s1, 4  ;;  %s30_s20 = int_to_ptr.hbm [resolvable:$true] %s29_s20 }
   0x3   :  { %13 = vsyncpa [#allocation4], 0  ;;  %s421_s21 = smov [#allocation5]   ;;  %s55_s25 = sshll.u32 %s485_s3, 4  ;;  %s56_s25 = int_to_ptr.hbm [resolvable:$true] %s55_s25 }
   0x4   :  { %s31_s22 = sshll.u32 %s421_s21, 4  ;;  %s422_s26 = smov 128   ;;  %s32_s22 = int_to_ptr.vmem [resolvable:$true] %s31_s22 }
   0x5   :  { %s423_s27 = smov 8   ;;  %s424_s28 = smov [#allocation8]  }
   0x6   :  { %37 = dma.hbm_to_vmem [thread:$0]  %s30_s20, 256, %s32_s22, [#allocation6], %s422_s26, %s422_s26, %s423_s27  }
   0x7   :  { %s57_s29 = sshll.u32 %s424_s28, 4  ;;  %s19_s7 = sshll.u32 %s482_s0, 4  ;;  %s58_s29 = int_to_ptr.vmem [resolvable:$true] %s57_s29  ;;  %s20_s7 = int_to_ptr.hbm [resolvable:$true] %s19_s7 }
   0x8   :  { %63 = dma.hbm_to_vmem [thread:$0]  %s56_s25, 2048, %s58_s29, [#allocation9], %s422_s26, %s422_s26, %s423_s27  }
   0x9   :  { %s42_s9 = sshll.u32 %s484_s2, 4  ;;  %s425_s10 = smov [#allocation2]   ;;  %s43_s9 = int_to_ptr.hbm [resolvable:$true] %s42_s9 }
   0xa   :  { %s21_s11 = sshll.u32 %s425_s10, 4  ;;  %s426_s3 = smov [#allocation7]   ;;  %s22_s11 = int_to_ptr.vmem [resolvable:$true] %s21_s11 }
   0xb   :  { %24 = dma.hbm_to_vmem [thread:$0]  %s20_s7, 128, %s22_s11, [#allocation3]  }
   0xc   :  { %s44_s12 = sshll.u32 %s426_s3, 4  ;;  %s69_s15 = sshll.u32 %s486_s4, 4  ;;  %s45_s12 = int_to_ptr.vmem [resolvable:$true] %s44_s12  ;;  %s70_s15 = int_to_ptr.hbm [resolvable:$true] %s69_s15 }
   0xd   :  { %50 = dma.hbm_to_vmem [thread:$0]  %s43_s9, 2048, %s45_s12, [#allocation6], %s422_s26, %s422_s26, %s423_s27  }
   0xe   :  { %s427_s0 = smov [#allocation10]  }
   0xf   :  { %s71_s16 = sshll.u32 %s427_s0, 4  ;;  %s72_s16 = int_to_ptr.vmem [resolvable:$true] %s71_s16 }
  0x10   :  { %74 = dma.hbm_to_vmem [thread:$0]  %s70_s15, 64, %s72_s16, [#allocation9]  }
  0x11   :  { %413 = dma.done.wait [#allocation3], 128  }
  0x12   :  { %414 = vsyncadd [#allocation3], 4294967168 }
  0x13   :  { %415 = dma.done.wait [#allocation6], 2304  }
  0x14   :  { %416 = vsyncadd [#allocation6], 4294964992 }
  0x15   :  { %417 = dma.done.wait [#allocation9], 2112  }
  0x16   :  { %418 = vsyncadd [#allocation9], 4294965184  ;;  %v98_v0 = vld [vmem:[#allocation5 + $0x8] sm:$0xff]  ;;  %v97_v1 = vld [vmem:[#allocation5] sm:$0xff]  ;;  %vm100_vm0 = vcmask 130048   ;;  %s428_s2 = smov [#allocation11]  }
  0x17   :  { %118 = vmatpush.msra.mxu0 %v98_v0  ;;  %v95_v2 = vld [vmem:[#allocation2] sm:$0xff]  ;;  %v156_v3 = vld [vmem:[#allocation7 + $0x78] sm:$0xff]  ;;  %v155_v4 = vld [vmem:[#allocation7 + $0x70] sm:$0xff]  ;;  %s238_s4 = sshll.u32 %s428_s2, 4  ;;  %s240_s19 = sshll.u32 %s487_s5, 4  ;;  %s239_s4 = int_to_ptr.vmem [resolvable:$true] %s238_s4  ;;  %s241_s19 = int_to_ptr.hbm [resolvable:$true] %s240_s19 }
  0x18   :  { %158 = vmatpush.msra.mxu1 %v156_v3  ;;  %v154_v5 = vld [vmem:[#allocation7 + $0x68] sm:$0xff]  ;;  %v153_v6 = vld [vmem:[#allocation7 + $0x60] sm:$0xff]  ;;  %v152_v7 = vld [vmem:[#allocation7 + $0x58] sm:$0xff] }
  0x19   :  { %119 = vmatpush.msra.mxu0 %v97_v1  ;;  %v151_v8 = vld [vmem:[#allocation7 + $0x50] sm:$0xff]  ;;  %v150_v9 = vld [vmem:[#allocation7 + $0x48] sm:$0xff]  ;;  %v149_v10 = vld [vmem:[#allocation7 + $0x40] sm:$0xff] }
  0x1a   :  { %252 = vmatmul.msk.f32.vlgmr.msra.gmra.mxu0 %vm100_vm0, %v95_v2  ;;  %159 = vmatpush.msra.mxu1 %v155_v4  ;;  %v148_v11 = vld [vmem:[#allocation7 + $0x38] sm:$0xff]  ;;  %v147_v12 = vld [vmem:[#allocation7 + $0x30] sm:$0xff]  ;;  %v146_v13 = vld [vmem:[#allocation7 + $0x28] sm:$0xff] }
  0x1b   :  { %v145_v14 = vld [vmem:[#allocation7 + $0x20] sm:$0xff]  ;;  %v144_v15 = vld [vmem:[#allocation7 + $0x18] sm:$0xff]  ;;  %v143_v17 = vld [vmem:[#allocation7 + $0x10] sm:$0xff] }
  0x1c   :  { %160 = vmatpush.msra.mxu1 %v154_v5  ;;  %v474_v16 = vld [vmem:[#allocation10] sm:$0x7]  ;;  %v142_v18 = vld [vmem:[#allocation7 + $0x8] sm:$0xff]  ;;  %v210_v39 = vld [vmem:[#allocation8 + $0x78] sm:$0xff] }
  0x1d   :  { %v99_v19 = vperm.slane %v474_v16, 0  ;;  %v141_v20 = vld [vmem:[#allocation7] sm:$0xff]  ;;  %212 = vmatpush.msra.mxu2 %v210_v39  ;;  %v209_v40 = vld [vmem:[#allocation8 + $0x70] sm:$0xff]  ;;  %v208_v41 = vld [vmem:[#allocation8 + $0x68] sm:$0xff]  ;;  %v157_v54 = vperm.slane %v474_v16, 1 }
  0x1e   :  { %161 = vmatpush.msra.mxu1 %v153_v6  ;;  %v207_v42 = vld [vmem:[#allocation8 + $0x60] sm:$0xff]  ;;  %v206_v43 = vld [vmem:[#allocation8 + $0x58] sm:$0xff]  ;;  %v205_v44 = vld [vmem:[#allocation8 + $0x50] sm:$0xff] }
  0x1f   :  { %213 = vmatpush.msra.mxu2 %v209_v40  ;;  %v204_v45 = vld [vmem:[#allocation8 + $0x48] sm:$0xff]  ;;  %v203_v46 = vld [vmem:[#allocation8 + $0x40] sm:$0xff]  ;;  %v202_v47 = vld [vmem:[#allocation8 + $0x38] sm:$0xff] }
  0x20   :  { %162 = vmatpush.msra.mxu1 %v152_v7  ;;  %v201_v48 = vld [vmem:[#allocation8 + $0x30] sm:$0xff]  ;;  %v200_v49 = vld [vmem:[#allocation8 + $0x28] sm:$0xff]  ;;  %v199_v50 = vld [vmem:[#allocation8 + $0x20] sm:$0xff] }
  0x21   :  { %214 = vmatpush.msra.mxu2 %v208_v41  ;;  %v198_v51 = vld [vmem:[#allocation8 + $0x18] sm:$0xff]  ;;  %v197_v52 = vld [vmem:[#allocation8 + $0x10] sm:$0xff]  ;;  %v196_v53 = vld [vmem:[#allocation8 + $0x8] sm:$0xff] }
  0x22   :  { %163 = vmatpush.msra.mxu1 %v151_v8  ;;  %v195_v55 = vld [vmem:[#allocation8] sm:$0xff] }
  0x23   :  { %215 = vmatpush.msra.mxu2 %v207_v42 }
  0x24   :  { %164 = vmatpush.msra.mxu1 %v150_v9 }
  0x25   :  { %216 = vmatpush.msra.mxu2 %v206_v43 }
  0x26   :  { %165 = vmatpush.msra.mxu1 %v149_v10  ;;  %v211_v10 = vperm.slane %v474_v16, 2 }
  0x27   :  { %217 = vmatpush.msra.mxu2 %v205_v44 }
  0x28   :  { %166 = vmatpush.msra.mxu1 %v148_v11 }
  0x29   :  { %218 = vmatpush.msra.mxu2 %v204_v45 }
  0x2a   :  { %167 = vmatpush.msra.mxu1 %v147_v12 }
  0x2b   :  { %219 = vmatpush.msra.mxu2 %v203_v46 }
  0x2c   :  { %168 = vmatpush.msra.mxu1 %v146_v13 }
  0x2d   :  { %220 = vmatpush.msra.mxu2 %v202_v47 }
  0x2e   :  { %169 = vmatpush.msra.mxu1 %v145_v14 }
  0x2f   :  { %221 = vmatpush.msra.mxu2 %v201_v48 }
  0x30   :  { %170 = vmatpush.msra.mxu1 %v144_v15 }
  0x31   :  { %222 = vmatpush.msra.mxu2 %v200_v49 }
  0x32   :  { %171 = vmatpush.msra.mxu1 %v143_v17 }
  0x33   :  { %223 = vmatpush.msra.mxu2 %v199_v50 }
  0x34   :  { %172 = vmatpush.msra.mxu1 %v142_v18 }
  0x35   :  { %224 = vmatpush.msra.mxu2 %v198_v51 }
  0x36   :  { %173 = vmatpush.msra.mxu1 %v141_v20 }
  0x37   :  { %225 = vmatpush.msra.mxu2 %v197_v52 }
  0x39   :  { %226 = vmatpush.msra.mxu2 %v196_v53 }
  0x3b   :  { %227 = vmatpush.msra.mxu2 %v195_v55 }
  0x97   :  { %v121_v21 = vpop.f32.mrf.mxu0 }
  0x98   :  { %v122_v22 = vadd.f32 %v121_v21, %v99_v19 }
  0x9a   :  { %v125_v23 = vmul.f32 7.5, %v122_v22  ;;  %v124_v36 = vmax.f32 %v122_v22, 0.0 }
  0x9c   :  { %v126_v24 = vand.u32 2147483647, %v125_v23 }
  0x9e   :  { %v127_v25 = vsub.f32 0.0, %v126_v24 }
  0xa0   :  { %v128_v26 = vmul.f32 1.442695, %v127_v25 }
  0xa2   :  { %261 = vpow2.f32 %v128_v26 }
  0xa8   :  { %v262_v27 = vpop.eup %261 }
  0xa9   :  { %v130_v28 = vadd.f32 1.0, %v262_v27  ;;  %v133_v29 = vmul.f32 -0.5, %v262_v27  ;;  %v136_v31 = vand.u32 2147483647, %v262_v27 }
  0xab   :  { %263 = vlog2.f32 %v130_v28  ;;  %v134_v30 = vadd.f32 1.0, %v133_v29  ;;  %vm137_vm1 = vcmp.lt.f32.partialorder %v136_v31, 0.0004427343 }
  0xad   :  { %v135_v34 = vmul.f32 %v262_v27, %v134_v30 }
  0xb1   :  { %v264_v32 = vpop.eup %263 }
  0xb2   :  { %v132_v33 = vmul.f32 0.6931472, %v264_v32 }
  0xb4   :  { %v138_v35 = vsel %vm137_vm1, %v135_v34, %v132_v33 }
  0xb5   :  { %v139_v37 = vmul.f32 0.13333334, %v138_v35 }
  0xb7   :  { %v140_v38 = vadd.f32 %v139_v37, %v124_v36 }
  0xb9   :  { %174 = vmatmul.f32.vlgmr.msra.gmra.mxu1 %v140_v38 }
 0x136   :  { %v175_v56 = vpop.f32.mrf.mxu1 }
 0x137   :  { %v176_v57 = vadd.f32 %v175_v56, %v157_v54 }
 0x139   :  { %v179_v58 = vmul.f32 7.5, %v176_v57  ;;  %v178_v7 = vmax.f32 %v176_v57, 0.0 }
 0x13b   :  { %v180_v59 = vand.u32 2147483647, %v179_v58 }
 0x13d   :  { %v181_v60 = vsub.f32 0.0, %v180_v59 }
 0x13f   :  { %v182_v61 = vmul.f32 1.442695, %v181_v60 }
 0x141   :  { %265 = vpow2.f32 %v182_v61 }
 0x147   :  { %v266_v62 = vpop.eup %265 }
 0x148   :  { %v184_v63 = vadd.f32 1.0, %v266_v62  ;;  %v187_v0 = vmul.f32 -0.5, %v266_v62  ;;  %v190_v2 = vand.u32 2147483647, %v266_v62 }
 0x14a   :  { %267 = vlog2.f32 %v184_v63  ;;  %v188_v1 = vadd.f32 1.0, %v187_v0  ;;  %vm191_vm2 = vcmp.lt.f32.partialorder %v190_v2, 0.0004427343 }
 0x14c   :  { %v189_v5 = vmul.f32 %v266_v62, %v188_v1 }
 0x150   :  { %v268_v3 = vpop.eup %267 }
 0x151   :  { %v186_v4 = vmul.f32 0.6931472, %v268_v3 }
 0x153   :  { %v192_v6 = vsel %vm191_vm2, %v189_v5, %v186_v4 }
 0x154   :  { %v193_v8 = vmul.f32 0.13333334, %v192_v6 }
 0x156   :  { %v194_v9 = vadd.f32 %v193_v8, %v178_v7 }
 0x158   :  { %228 = vmatmul.f32.vlgmr.msra.gmra.mxu2 %v194_v9 }
 0x1db   :  { %v229_v11 = vpop.f32.mrf.mxu2 }
 0x1dc   :  { %v230_v12 = vadd.f32 %v229_v11, %v211_v10 }
 0x1de   :  { %232 = vst [vmem:[#allocation11] sm:$0xff] %v230_v12 }
 0x1df   :  { %243 = dma.vmem_to_hbm [thread:$0]  %s239_s4, 128, %s241_s19, [#allocation4]  }
 0x1e0   :  { %419 = dma.done.wait [#allocation4], 128  }
 0x1e1   :  { %420 = vsyncadd [#allocation4], 4294967168 }
 0x1e2   :  { %248 = vsyncpa [#allocation3], 1 }
 0x1e3   :  { %249 = vsyncpa [#allocation6], 1 }
 0x1e4   :  { %250 = vsyncpa [#allocation9], 1 }
 0x1e5   :  { %251 = vsyncpa [#allocation4], 1 }

// kernel: tpu_custom_call.1
= control target key start
LH: loop header
LB: loop body
LE: loop exit
PB: predicated region body
PF: predicated region fallthrough
CT: control target
= control target key end

     0   :  { %10 = vsyncpa [#allocation3], 0  ;;  %s482_s0 = inlined_call_operand.hbm [shape: f32[8,16], index: 0, kind: input, shape index: {}]   ;;  %s483_s1 = inlined_call_operand.hbm [shape: f32[16,128], index: 1, kind: input, shape index: {}]   ;;  %s484_s2 = inlined_call_operand.hbm [shape: f32[128,128], index: 2, kind: input, shape index: {}]   ;;  %s485_s3 = inlined_call_operand.hbm [shape: f32[128,128], index: 3, kind: input, shape index: {}]   ;;  %s486_s4 = inlined_call_operand.hbm [shape: f32[3,128], index: 4, kind: input, shape index: {}]   ;;  %s487_s5 = inlined_call_operand.hbm [shape: f32[8,128], index: 5, kind: output, shape index: {}]  }
   0x1   :  { %11 = vsyncpa [#allocation6], 0 }
   0x2   :  { %12 = vsyncpa [#allocation9], 0  ;;  %s29_s20 = sshll.u32 %s483_s1, 4  ;;  %s30_s20 = int_to_ptr.hbm [resolvable:$true] %s29_s20 }
   0x3   :  { %13 = vsyncpa [#allocation4], 0  ;;  %s421_s21 = smov [#allocation5]   ;;  %s55_s25 = sshll.u32 %s485_s3, 4  ;;  %s56_s25 = int_to_ptr.hbm [resolvable:$true] %s55_s25 }
   0x4   :  { %s31_s22 = sshll.u32 %s421_s21, 4  ;;  %s422_s26 = smov 128   ;;  %s32_s22 = int_to_ptr.vmem [resolvable:$true] %s31_s22 }
   0x5   :  { %s423_s27 = smov 8   ;;  %s424_s28 = smov [#allocation8]  }
   0x6   :  { %37 = dma.hbm_to_vmem [thread:$0]  %s30_s20, 256, %s32_s22, [#allocation6], %s422_s26, %s422_s26, %s423_s27  }
   0x7   :  { %s57_s29 = sshll.u32 %s424_s28, 4  ;;  %s19_s7 = sshll.u32 %s482_s0, 4  ;;  %s58_s29 = int_to_ptr.vmem [resolvable:$true] %s57_s29  ;;  %s20_s7 = int_to_ptr.hbm [resolvable:$true] %s19_s7 }
   0x8   :  { %63 = dma.hbm_to_vmem [thread:$0]  %s56_s25, 2048, %s58_s29, [#allocation9], %s422_s26, %s422_s26, %s423_s27  }
   0x9   :  { %s42_s9 = sshll.u32 %s484_s2, 4  ;;  %s425_s10 = smov [#allocation2]   ;;  %s43_s9 = int_to_ptr.hbm [resolvable:$true] %s42_s9 }
   0xa   :  { %s21_s11 = sshll.u32 %s425_s10, 4  ;;  %s426_s3 = smov [#allocation7]   ;;  %s22_s11 = int_to_ptr.vmem [resolvable:$true] %s21_s11 }
   0xb   :  { %24 = dma.hbm_to_vmem [thread:$0]  %s20_s7, 128, %s22_s11, [#allocation3]  }
   0xc   :  { %s44_s12 = sshll.u32 %s426_s3, 4  ;;  %s69_s15 = sshll.u32 %s486_s4, 4  ;;  %s45_s12 = int_to_ptr.vmem [resolvable:$true] %s44_s12  ;;  %s70_s15 = int_to_ptr.hbm [resolvable:$true] %s69_s15 }
   0xd   :  { %50 = dma.hbm_to_vmem [thread:$0]  %s43_s9, 2048, %s45_s12, [#allocation6], %s422_s26, %s422_s26, %s423_s27  }
   0xe   :  { %s427_s0 = smov [#allocation10]  }
   0xf   :  { %s71_s16 = sshll.u32 %s427_s0, 4  ;;  %s72_s16 = int_to_ptr.vmem [resolvable:$true] %s71_s16 }
  0x10   :  { %74 = dma.hbm_to_vmem [thread:$0]  %s70_s15, 64, %s72_s16, [#allocation9]  }
  0x11   :  { %413 = dma.done.wait [#allocation3], 128  }
  0x12   :  { %414 = vsyncadd [#allocation3], 4294967168 }
  0x13   :  { %415 = dma.done.wait [#allocation6], 2304  }
  0x14   :  { %416 = vsyncadd [#allocation6], 4294964992 }
  0x15   :  { %417 = dma.done.wait [#allocation9], 2112  }
  0x16   :  { %418 = vsyncadd [#allocation9], 4294965184  ;;  %v98_v0 = vld [vmem:[#allocation5 + $0x8] sm:$0xff]  ;;  %v97_v1 = vld [vmem:[#allocation5] sm:$0xff]  ;;  %vm100_vm0 = vcmask 130048   ;;  %s428_s2 = smov [#allocation11]  }
  0x17   :  { %118 = vmatpush.msra.mxu0 %v98_v0  ;;  %v95_v2 = vld [vmem:[#allocation2] sm:$0xff]  ;;  %v156_v3 = vld [vmem:[#allocation7 + $0x78] sm:$0xff]  ;;  %v155_v4 = vld [vmem:[#allocation7 + $0x70] sm:$0xff]  ;;  %s238_s4 = sshll.u32 %s428_s2, 4  ;;  %s240_s19 = sshll.u32 %s487_s5, 4  ;;  %s239_s4 = int_to_ptr.vmem [resolvable:$true] %s238_s4  ;;  %s241_s19 = int_to_ptr.hbm [resolvable:$true] %s240_s19 }
  0x18   :  { %158 = vmatpush.msra.mxu1 %v156_v3  ;;  %v154_v5 = vld [vmem:[#allocation7 + $0x68] sm:$0xff]  ;;  %v153_v6 = vld [vmem:[#allocation7 + $0x60] sm:$0xff]  ;;  %v152_v7 = vld [vmem:[#allocation7 + $0x58] sm:$0xff] }
  0x19   :  { %119 = vmatpush.msra.mxu0 %v97_v1  ;;  %v151_v8 = vld [vmem:[#allocation7 + $0x50] sm:$0xff]  ;;  %v150_v9 = vld [vmem:[#allocation7 + $0x48] sm:$0xff]  ;;  %v149_v10 = vld [vmem:[#allocation7 + $0x40] sm:$0xff] }
  0x1a   :  { %252 = vmatmul.msk.f32.vlgmr.msra.gmra.mxu0 %vm100_vm0, %v95_v2  ;;  %159 = vmatpush.msra.mxu1 %v155_v4  ;;  %v148_v11 = vld [vmem:[#allocation7 + $0x38] sm:$0xff]  ;;  %v147_v12 = vld [vmem:[#allocation7 + $0x30] sm:$0xff]  ;;  %v146_v13 = vld [vmem:[#allocation7 + $0x28] sm:$0xff] }
  0x1b   :  { %v145_v14 = vld [vmem:[#allocation7 + $0x20] sm:$0xff]  ;;  %v144_v15 = vld [vmem:[#allocation7 + $0x18] sm:$0xff]  ;;  %v143_v17 = vld [vmem:[#allocation7 + $0x10] sm:$0xff] }
  0x1c   :  { %160 = vmatpush.msra.mxu1 %v154_v5  ;;  %v474_v16 = vld [vmem:[#allocation10] sm:$0x7]  ;;  %v142_v18 = vld [vmem:[#allocation7 + $0x8] sm:$0xff]  ;;  %v210_v39 = vld [vmem:[#allocation8 + $0x78] sm:$0xff] }
  0x1d   :  { %v99_v19 = vperm.slane %v474_v16, 0  ;;  %v141_v20 = vld [vmem:[#allocation7] sm:$0xff]  ;;  %212 = vmatpush.msra.mxu2 %v210_v39  ;;  %v209_v40 = vld [vmem:[#allocation8 + $0x70] sm:$0xff]  ;;  %v208_v41 = vld [vmem:[#allocation8 + $0x68] sm:$0xff]  ;;  %v157_v54 = vperm.slane %v474_v16, 1 }
  0x1e   :  { %161 = vmatpush.msra.mxu1 %v153_v6  ;;  %v207_v42 = vld [vmem:[#allocation8 + $0x60] sm:$0xff]  ;;  %v206_v43 = vld [vmem:[#allocation8 + $0x58] sm:$0xff]  ;;  %v205_v44 = vld [vmem:[#allocation8 + $0x50] sm:$0xff] }
  0x1f   :  { %213 = vmatpush.msra.mxu2 %v209_v40  ;;  %v204_v45 = vld [vmem:[#allocation8 + $0x48] sm:$0xff]  ;;  %v203_v46 = vld [vmem:[#allocation8 + $0x40] sm:$0xff]  ;;  %v202_v47 = vld [vmem:[#allocation8 + $0x38] sm:$0xff] }
  0x20   :  { %162 = vmatpush.msra.mxu1 %v152_v7  ;;  %v201_v48 = vld [vmem:[#allocation8 + $0x30] sm:$0xff]  ;;  %v200_v49 = vld [vmem:[#allocation8 + $0x28] sm:$0xff]  ;;  %v199_v50 = vld [vmem:[#allocation8 + $0x20] sm:$0xff] }
  0x21   :  { %214 = vmatpush.msra.mxu2 %v208_v41  ;;  %v198_v51 = vld [vmem:[#allocation8 + $0x18] sm:$0xff]  ;;  %v197_v52 = vld [vmem:[#allocation8 + $0x10] sm:$0xff]  ;;  %v196_v53 = vld [vmem:[#allocation8 + $0x8] sm:$0xff] }
  0x22   :  { %163 = vmatpush.msra.mxu1 %v151_v8  ;;  %v195_v55 = vld [vmem:[#allocation8] sm:$0xff] }
  0x23   :  { %215 = vmatpush.msra.mxu2 %v207_v42 }
  0x24   :  { %164 = vmatpush.msra.mxu1 %v150_v9 }
  0x25   :  { %216 = vmatpush.msra.mxu2 %v206_v43 }
  0x26   :  { %165 = vmatpush.msra.mxu1 %v149_v10  ;;  %v211_v10 = vperm.slane %v474_v16, 2 }
  0x27   :  { %217 = vmatpush.msra.mxu2 %v205_v44 }
  0x28   :  { %166 = vmatpush.msra.mxu1 %v148_v11 }
  0x29   :  { %218 = vmatpush.msra.mxu2 %v204_v45 }
  0x2a   :  { %167 = vmatpush.msra.mxu1 %v147_v12 }
  0x2b   :  { %219 = vmatpush.msra.mxu2 %v203_v46 }
  0x2c   :  { %168 = vmatpush.msra.mxu1 %v146_v13 }
  0x2d   :  { %220 = vmatpush.msra.mxu2 %v202_v47 }
  0x2e   :  { %169 = vmatpush.msra.mxu1 %v145_v14 }
  0x2f   :  { %221 = vmatpush.msra.mxu2 %v201_v48 }
  0x30   :  { %170 = vmatpush.msra.mxu1 %v144_v15 }
  0x31   :  { %222 = vmatpush.msra.mxu2 %v200_v49 }
  0x32   :  { %171 = vmatpush.msra.mxu1 %v143_v17 }
  0x33   :  { %223 = vmatpush.msra.mxu2 %v199_v50 }
  0x34   :  { %172 = vmatpush.msra.mxu1 %v142_v18 }
  0x35   :  { %224 = vmatpush.msra.mxu2 %v198_v51 }
  0x36   :  { %173 = vmatpush.msra.mxu1 %v141_v20 }
  0x37   :  { %225 = vmatpush.msra.mxu2 %v197_v52 }
  0x39   :  { %226 = vmatpush.msra.mxu2 %v196_v53 }
  0x3b   :  { %227 = vmatpush.msra.mxu2 %v195_v55 }
  0x97   :  { %v121_v21 = vpop.f32.mrf.mxu0 }
  0x98   :  { %v122_v22 = vadd.f32 %v121_v21, %v99_v19 }
  0x9a   :  { %v125_v23 = vmul.f32 7.5, %v122_v22  ;;  %v124_v36 = vmax.f32 %v122_v22, 0.0 }
  0x9c   :  { %v126_v24 = vand.u32 2147483647, %v125_v23 }
  0x9e   :  { %v127_v25 = vsub.f32 0.0, %v126_v24 }
  0xa0   :  { %v128_v26 = vmul.f32 1.442695, %v127_v25 }
  0xa2   :  { %261 = vpow2.f32 %v128_v26 }
  0xa8   :  { %v262_v27 = vpop.eup %261 }
  0xa9   :  { %v130_v28 = vadd.f32 1.0, %v262_v27  ;;  %v133_v29 = vmul.f32 -0.5, %v262_v27  ;;  %v136_v31 = vand.u32 2147483647, %v262_v27 }
  0xab   :  { %263 = vlog2.f32 %v130_v28  ;;  %v134_v30 = vadd.f32 1.0, %v133_v29  ;;  %vm137_vm1 = vcmp.lt.f32.partialorder %v136_v31, 0.0004427343 }
  0xad   :  { %v135_v34 = vmul.f32 %v262_v27, %v134_v30 }
  0xb1   :  { %v264_v32 = vpop.eup %263 }
  0xb2   :  { %v132_v33 = vmul.f32 0.6931472, %v264_v32 }
  0xb4   :  { %v138_v35 = vsel %vm137_vm1, %v135_v34, %v132_v33 }
  0xb5   :  { %v139_v37 = vmul.f32 0.13333334, %v138_v35 }
  0xb7   :  { %v140_v38 = vadd.f32 %v139_v37, %v124_v36 }
  0xb9   :  { %174 = vmatmul.f32.vlgmr.msra.gmra.mxu1 %v140_v38 }
 0x136   :  { %v175_v56 = vpop.f32.mrf.mxu1 }
 0x137   :  { %v176_v57 = vadd.f32 %v175_v56, %v157_v54 }
 0x139   :  { %v179_v58 = vmul.f32 7.5, %v176_v57  ;;  %v178_v7 = vmax.f32 %v176_v57, 0.0 }
 0x13b   :  { %v180_v59 = vand.u32 2147483647, %v179_v58 }
 0x13d   :  { %v181_v60 = vsub.f32 0.0, %v180_v59 }
 0x13f   :  { %v182_v61 = vmul.f32 1.442695, %v181_v60 }
 0x141   :  { %265 = vpow2.f32 %v182_v61 }
 0x147   :  { %v266_v62 = vpop.eup %265 }
 0x148   :  { %v184_v63 = vadd.f32 1.0, %v266_v62  ;;  %v187_v0 = vmul.f32 -0.5, %v266_v62  ;;  %v190_v2 = vand.u32 2147483647, %v266_v62 }
 0x14a   :  { %267 = vlog2.f32 %v184_v63  ;;  %v188_v1 = vadd.f32 1.0, %v187_v0  ;;  %vm191_vm2 = vcmp.lt.f32.partialorder %v190_v2, 0.0004427343 }
 0x14c   :  { %v189_v5 = vmul.f32 %v266_v62, %v188_v1 }
 0x150   :  { %v268_v3 = vpop.eup %267 }
 0x151   :  { %v186_v4 = vmul.f32 0.6931472, %v268_v3 }
 0x153   :  { %v192_v6 = vsel %vm191_vm2, %v189_v5, %v186_v4 }
 0x154   :  { %v193_v8 = vmul.f32 0.13333334, %v192_v6 }
 0x156   :  { %v194_v9 = vadd.f32 %v193_v8, %v178_v7 }
 0x158   :  { %228 = vmatmul.f32.vlgmr.msra.gmra.mxu2 %v194_v9 }
 0x1db   :  { %v229_v11 = vpop.f32.mrf.mxu2 }
 0x1dc   :  { %v230_v12 = vadd.f32 %v229_v11, %v211_v10 }
 0x1de   :  { %232 = vst [vmem:[#allocation11] sm:$0xff] %v230_v12 }
 0x1df   :  { %243 = dma.vmem_to_hbm [thread:$0]  %s239_s4, 128, %s241_s19, [#allocation4]  }
 0x1e0   :  { %419 = dma.done.wait [#allocation4], 128  }
 0x1e1   :  { %420 = vsyncadd [#allocation4], 4294967168 }
 0x1e2   :  { %248 = vsyncpa [#allocation3], 1 }
 0x1e3   :  { %249 = vsyncpa [#allocation6], 1 }
 0x1e4   :  { %250 = vsyncpa [#allocation9], 1 }
 0x1e5   :  { %251 = vsyncpa [#allocation4], 1 }

</bundles_post_ra>
